<compile_context>
chip_gen: v7x
topology: tpu7x:2x2x1
jax: 0.10.0
libtpu: 0.0.40
codegen_flags: <defaults>
</compile_context>

<pallas_src>
import jax
import jax.numpy as jnp
from jax.experimental import pallas as pl
from jax.experimental.pallas import tpu as pltpu

_SUB = 8      # sublane granularity
_LANE = 128   # lane granularity
_MAX_TILE = 1024  # max lane-tile per grid step


def _round_up(x, m):
    return ((x + m - 1) // m) * m


def _mv2_kernel(lam_ref, slab_ref, out_ref):
    # Pure VPU elementwise update; E2 @ t collapses to t (E2 = identity).
    lam = lam_ref[0]
    t = slab_ref[0]       # (8, tile)
    t2 = slab_ref[1]      # (8, tile)
    v2 = slab_ref[2]      # (8, tile)
    out_ref[...] = v2 + lam * (t - t2)


def mv2_layer(t, t2, v2, lamda):
    """v2 = v2 + lamda * (E2 @ t - t2) with E2 = I(4).

    Accepts column vectors (4, 1) exactly like the PyTorch module, or a
    batched slab (4, B) of B independent problem instances.
    """
    t = jnp.asarray(t, jnp.float32)
    t2 = jnp.asarray(t2, jnp.float32)
    v2 = jnp.asarray(v2, jnp.float32)
    lam = jnp.asarray(lamda, jnp.float32).reshape(1)

    n, b = v2.shape
    # Lane-tile selection: one block for small B, 1024-lane blocks otherwise.
    tile = min(_round_up(b, _LANE), _MAX_TILE)
    bp = _round_up(b, tile)           # padded lane extent (multiple of tile)
    np_ = _round_up(n, _SUB)          # padded sublane extent (4 -> 8)

    pad = [(0, np_ - n), (0, bp - b)]
    # One packed slab -> one input DMA per grid step.
    slab = jnp.stack([jnp.pad(t, pad), jnp.pad(t2, pad), jnp.pad(v2, pad)])

    grid = (bp // tile,)
    out = pl.pallas_call(
        _mv2_kernel,
        out_shape=jax.ShapeDtypeStruct((np_, bp), jnp.float32),
        grid=grid,
        in_specs=[
            pl.BlockSpec(memory_space=pltpu.SMEM),                 # lamda scalar
            pl.BlockSpec((3, np_, tile), lambda i: (0, 0, i)),     # [t; t2; v2]
        ],
        out_specs=pl.BlockSpec((np_, tile), lambda i: (0, i)),
        compiler_params=pltpu.CompilerParams(
            dimension_semantics=("parallel",)),
    )(lam, slab)

    return out[:n, :b]


if __name__ == "__main__":
    key = jax.random.PRNGKey(0)
    k_t, k_t2, k_v2, k_bt, k_bt2, k_bv2 = jax.random.split(key, 6)

    lamda = jnp.float32(0.5)

    # Case 1: shapes exactly as the PyTorch module implies — (4, 1) columns.
    t = jax.random.normal(k_t, (4, 1), dtype=jnp.float32)
    t2 = jax.random.normal(k_t2, (4, 1), dtype=jnp.float32)
    v2 = jax.random.normal(k_v2, (4, 1), dtype=jnp.float32)

    out = jax.block_until_ready(mv2_layer(t, t2, v2, lamda))
    ref = v2 + lamda * (jnp.eye(4, dtype=jnp.float32) @ t - t2)
    assert out.shape == (4, 1)
    assert jnp.allclose(out, ref, atol=1e-6), (out, ref)

    # Case 2: batched lane-dense path — 256 independent problem instances.
    B = 256
    tb = jax.random.normal(k_bt, (4, B), dtype=jnp.float32)
    t2b = jax.random.normal(k_bt2, (4, B), dtype=jnp.float32)
    v2b = jax.random.normal(k_bv2, (4, B), dtype=jnp.float32)

    outb = jax.block_until_ready(mv2_layer(tb, t2b, v2b, lamda))
    refb = v2b + lamda * (tb - t2b)
    assert outb.shape == (4, B)
    assert jnp.allclose(outb, refb, atol=1e-6)

    print("KERNEL_OK")
</pallas_src>

<mosaic_0001>
module attributes {stable_mosaic.version = 11 : i64} {
  func.func @_mv2_kernel(%arg0: i32, %arg1: memref<1xf32, #tpu.memory_space<smem>>, %arg2: memref<3x8x128xf32, #tpu.memory_space<vmem>>, %arg3: memref<8x128xf32, #tpu.memory_space<vmem>>) attributes {dimension_semantics = [#tpu.dimension_semantics<parallel>], iteration_bounds = array<i64: 1>, scalar_prefetch = 0 : i64, scratch_operands = 0 : i64, tpu.core_type = #tpu.core_type<tc>, window_params = [{transform_indices = @transform_0, window_bounds = array<i64: 1>}, {transform_indices = @transform_1, window_bounds = array<i64: 3, 8, 128>}, {transform_indices = @transform_2, window_bounds = array<i64: 8, 128>}]} {
    %c0 = arith.constant 0 : index
    %0 = memref.load %arg1[%c0] : memref<1xf32, #tpu.memory_space<smem>>
    %c0_0 = arith.constant 0 : index
    %c0_1 = arith.constant 0 : index
    %c0_2 = arith.constant 0 : index
    %1 = vector.load %arg2[%c0_0, %c0_1, %c0_2] : memref<3x8x128xf32, #tpu.memory_space<vmem>>, vector<1x8x128xf32>
    %2 = vector.shape_cast %1 : vector<1x8x128xf32> to vector<8x128xf32>
    %c1 = arith.constant 1 : index
    %c0_3 = arith.constant 0 : index
    %c0_4 = arith.constant 0 : index
    %3 = vector.load %arg2[%c1, %c0_3, %c0_4] : memref<3x8x128xf32, #tpu.memory_space<vmem>>, vector<1x8x128xf32>
    %4 = vector.shape_cast %3 : vector<1x8x128xf32> to vector<8x128xf32>
    %c2 = arith.constant 2 : index
    %c0_5 = arith.constant 0 : index
    %c0_6 = arith.constant 0 : index
    %5 = vector.load %arg2[%c2, %c0_5, %c0_6] : memref<3x8x128xf32, #tpu.memory_space<vmem>>, vector<1x8x128xf32>
    %6 = vector.shape_cast %5 : vector<1x8x128xf32> to vector<8x128xf32>
    %7 = arith.subf %2, %4 : vector<8x128xf32>
    %8 = vector.broadcast %0 : f32 to vector<8x128xf32>
    %9 = arith.mulf %8, %7 : vector<8x128xf32>
    %10 = arith.addf %6, %9 : vector<8x128xf32>
    %c0_7 = arith.constant 0 : index
    %c0_8 = arith.constant 0 : index
    %11 = vector.load %arg3[%c0_7, %c0_8] : memref<8x128xf32, #tpu.memory_space<vmem>>, vector<8x128xf32>
    tpu.vector_store %arg3[%c0_7, %c0_8], %10 {strides = array<i32>} : memref<8x128xf32, #tpu.memory_space<vmem>>, vector<8x128xf32>,
    return
  }
  func.func @transform_0(%arg0: i32) -> i32 {
    %c0_i32 = arith.constant 0 : i32
    %c0_i32_0 = arith.constant 0 : i32
    return %c0_i32 : i32
  }
  func.func @transform_1(%arg0: i32) -> (i32, i32, i32) {
    %c0_i32 = arith.constant 0 : i32
    %c0_i32_0 = arith.constant 0 : i32
    %c0_i32_1 = arith.constant 0 : i32
    return %c0_i32, %c0_i32_0, %arg0 : i32, i32, i32
  }
  func.func @transform_2(%arg0: i32) -> (i32, i32) {
    %c0_i32 = arith.constant 0 : i32
    %c0_i32_0 = arith.constant 0 : i32
    return %c0_i32, %arg0 : i32, i32
  }
}

</mosaic_0001>

<bundles_post_ra>
// kernel: tpu_custom_call.1
= control target key start
LH: loop header
LB: loop body
LE: loop exit
PB: predicated region body
PF: predicated region fallthrough
CT: control target
= control target key end

     0   :  { %8 = vsyncpa [#allocation4], 0  ;;  %s151_s0 = inlined_call_operand.<no memory space> [shape: f32[1], index: 0, kind: input, shape index: {}]   ;;  %s152_s1 = inlined_call_operand.hbm [shape: f32[3,8,128], index: 1, kind: input, shape index: {}]   ;;  %s153_s2 = inlined_call_operand.hbm [shape: f32[8,128], index: 2, kind: output, shape index: {}]  }
   0x1   :  { %9 = vsyncpa [#allocation5], 0  ;;  %s105_s9 = smov [#allocation3]   ;;  %s57_s13 = scalar_lea.hbm %s152_s1, 384 }
   0x2   :  { %s17_s10 = sshll.u32 %s105_s9, 4  ;;  %p58_p0 = scmp.ne.s32.totalorder %s152_s1, %s57_s13  ;;  %s18_s10 = int_to_ptr.vmem [resolvable:$true] %s17_s10 }
   0x3   :  { %p61_p1 = scmp.lt.u32.totalorder %s57_s13, %s152_s1 }
   0x5   :  { %p63_p2 = pnand %p61_p1, %p58_p0 }
   0x7   :  { %66 = shalt.err (!%p63_p2)
}
   0x8   :  { %s67_s18 = scalar_lea.vmem %s18_s10, 384  ;;  %p72_p4 = scmp.lt.s32.totalorder %s18_s10, %s18_s10 }
   0x9   :  { %p68_p3 = scmp.ne.s32.totalorder %s18_s10, %s67_s18  ;;  %p73_p5 = scmp.lt.s32.totalorder %s67_s18, %s67_s18 }
   0xb   :  { %p74_p6 = por %p73_p5, %p72_p4 }
   0xd   :  { %p75_p7 = pnand %p74_p6, %p68_p3 }
   0xf   :  { %78 = shalt.err (!%p75_p7)
}
  0x10   :  { %s106_s19 = smov 128   ;;  %s107_s20 = smov 8  }
  0x11   :  { %23 = dma.hbm_to_vmem [thread:$0]  %s152_s1, 384, %s18_s10, [#allocation4], %s106_s19, %s106_s19, %s107_s20  }
  0x12   :  { %101 = dma.done.wait [#allocation4], 384  }
  0x13   :  { %102 = vsyncadd [#allocation4], 4294966912  ;;  %v28_v0 = vld [vmem:[#allocation3] sm:$0xff]  ;;  %v30_v1 = vld [vmem:[#allocation3 + $0x8] sm:$0xff]  ;;  %v34_v2 = vstv %s151_s0  ;;  %s108_s25 = smov [#allocation6]  }
  0x14   :  { %v33_v3 = vsub.f32 %v28_v0, %v30_v1  ;;  %v32_v4 = vld [vmem:[#allocation3 + $0x10] sm:$0xff]  ;;  %s44_s26 = sshll.u32 %s108_s25, 4  ;;  %s45_s26 = int_to_ptr.vmem [resolvable:$true] %s44_s26 }
  0x15   :  { %s79_s27 = scalar_lea.vmem %s45_s26, 128  ;;  %p84_p9 = scmp.lt.s32.totalorder %s45_s26, %s45_s26 }
  0x16   :  { %v35_v5 = vmul.f32 %v34_v2, %v33_v3  ;;  %p80_p8 = scmp.ne.s32.totalorder %s45_s26, %s79_s27  ;;  %p85_p10 = scmp.lt.s32.totalorder %s79_s27, %s79_s27 }
  0x18   :  { %v36_v6 = vadd.f32 %v35_v5, %v32_v4  ;;  %p86_p11 = por %p85_p10, %p84_p9 }
  0x1a   :  { %37 = vst [vmem:[#allocation6] sm:$0xff] %v36_v6  ;;  %p87_p12 = pnand %p86_p11, %p80_p8 }
  0x1c   :  { %90 = shalt.err (!%p87_p12)
}
  0x1d   :  { %s91_s29 = scalar_lea.hbm %s153_s2, 128 }
  0x1e   :  { %p92_p13 = scmp.ne.s32.totalorder %s153_s2, %s91_s29  ;;  %p95_p0 = scmp.lt.u32.totalorder %s91_s29, %s153_s2 }
  0x20   :  { %p97_p1 = pnand %p95_p0, %p92_p13 }
  0x22   :  { %100 = shalt.err (!%p97_p1)
}
  0x23   :  { %47 = dma.vmem_to_hbm [thread:$0]  %s45_s26, 128, %s153_s2, [#allocation5]  }
  0x24   :  { %103 = dma.done.wait [#allocation5], 128  }
  0x25   :  { %104 = vsyncadd [#allocation5], 4294967168 }
  0x26   :  { %51 = vsyncpa [#allocation4], 1 }
  0x27   :  { %52 = vsyncpa [#allocation5], 1 }

</bundles_post_ra>
